<compile_context>
chip_gen: v5e
topology: v5e:2x2
jax: 0.10.0
libtpu: 0.0.40
codegen_flags: <defaults>
</compile_context>

<pallas_src>
import jax
import jax.numpy as jnp
from jax.experimental import pallas as pl
from jax.experimental.pallas import tpu as pltpu


def _upsample_shuffle_kernel(x_ref, g_ref, b_ref, o_ref):
    """One fused conv + pixel-shuffle block.

    x_ref: (1, C, ths, p*W)      input super-rows (p original rows each)
    g_ref: (C, p*W, C*p*rWr)     f32 fused conv + shuffle placement matrices (per c_in)
    b_ref: (1, C*p*rWr)          f32 bias replicated along the shuffled lane axis
    o_ref: (1, C, ths, p*rWr)    final (pixel-shuffled) output super-rows
    """
    n_chan = x_ref.shape[1]
    out_w = o_ref.shape[3]
    x = x_ref[0]                                     # (C, ths, p*W)
    # C accumulating dots into a single wide f32 accumulator (review item 1).
    acc = jnp.dot(x[0], g_ref[0], preferred_element_type=jnp.float32)
    for cin in range(1, n_chan):                     # static tiny loop (C is small)
        acc = acc + jnp.dot(x[cin], g_ref[cin],
                            preferred_element_type=jnp.float32)
    acc = acc + b_ref[...]                           # (1, C*p*rWr) broadcast over rows
    for c in range(n_chan):                          # lane-aligned static slices
        o_ref[0, c] = acc[:, c * out_w:(c + 1) * out_w].astype(o_ref.dtype)


def _vmem_capacity_bytes(default=64 * 1024 * 1024):
    """Per-generation VMEM capacity (conservative fallback if the query fails)."""
    try:
        info = pltpu.get_tpu_info()
        for attr in ("vmem_capacity_bytes", "vmem_size_bytes"):
            cap = int(getattr(info, attr, 0) or 0)
            if cap > 0:
                return cap
    except Exception:
        pass
    return default


def _sublane_multiple(dtype):
    """Row-tile granularity matching the dtype's sublane packing."""
    return {4: 8, 2: 16, 1: 32}.get(jnp.dtype(dtype).itemsize, 8)


def _choose_row_merge(H, W, r, n_chan, g_budget_bytes):
    """Row-merge factor p.

    Input rows are processed p at a time (free (N,C,H,W)->(N,C,H/p,p*W) view) so the
    shuffled output block's lane dim p*r*W*r becomes a dense multiple of 128 (unmasked
    stores).  If the fused placement matrix still fits the budget, p is raised further
    until the *input* lane dim p*W reaches 128 as well.
    """
    rWr = r * W * r
    cands = [p for p in (1, 2, 4, 8, 16) if H % p == 0]
    if not cands:
        return 1

    def g_bytes(p):
        return n_chan * n_chan * (p * W) * (p * rWr) * 4

    def ok(p):
        return g_bytes(p) <= g_budget_bytes

    # Smallest p giving 128-multiple (dense, unmasked) output stores.
    p_out = next((p for p in cands if (p * rWr) % 128 == 0 and (p == 1 or ok(p))), 1)
    # Optionally raise p until the input lane dim is dense too (budget permitting).
    for p in cands:
        if (p >= p_out and (p * rWr) % 128 == 0 and p * W >= 128 and ok(p)):
            return p
    return p_out


def _pick_row_tile(n_rows, cap, sub):
    """Largest multiple-of-`sub` divisor of n_rows that is <= cap.

    Falls back to the full extent (a full-dim block is always layout-legal)."""
    cap = max(sub, min(int(cap), n_rows))
    best = None
    for t in range(sub, cap + 1, sub):
        if n_rows % t == 0:
            best = t
    return best if best is not None else n_rows


def upsample_forward(x, weight, bias, factor=2, *,
                     vmem_limit_bytes=None, g_budget_bytes=2 * 1024 * 1024):
    """Equivalent of UpSample.forward: y = PixelShuffle(Conv1x1(x)).

    x      : (N, C, H, W)
    weight : (OC, C, 1, 1) with OC = C * factor**2   (PyTorch conv layout)
    bias   : (OC,)
    returns (N, C, H*factor, W*factor)  in NCHW, matching PyTorch exactly.
    """
    N, C, H, W = x.shape
    r = int(factor)
    OC = C * r * r
    rWr = r * W * r
    assert weight.shape == (OC, C, 1, 1)
    assert bias.shape == (OC,)

    itemsize = jnp.dtype(x.dtype).itemsize
    sub = _sublane_multiple(x.dtype)

    # ---- Row-merge factor: lane-dense input / output views (free reshapes). ----
    p = _choose_row_merge(H, W, r, C, g_budget_bytes)
    Hs = H // p                       # super-rows
    in_w = p * W                      # input lane width per super-row
    out_w = p * rWr                   # output lane width per super-row (>=128 when possible)
    acc_w = C * out_w                 # fused accumulator width

    # ---- Fused conv + pixel-shuffle placement matrices (built once, kept f32). ----
    # G[cin, q*W + w, c*out_w + q*rWr + i*W*r + w*r + j] = weight[c*r*r + i*r + j, cin]
    w2 = weight.reshape(OC, C).astype(jnp.float32)               # [oc, cin]
    wk = w2.reshape(C, r, r, C)                                   # [c, i, j, cin]
    eye_p = jnp.eye(p, dtype=jnp.float32)
    eye_w = jnp.eye(W, dtype=jnp.float32)
    g_cat = jnp.einsum('cijk,qQ,wv->kqwcQivj', wk, eye_p, eye_w)
    g_cat = g_cat.reshape(C, in_w, acc_w)                         # f32 (not quantized to x.dtype)

    bk = bias.astype(jnp.float32).reshape(C, 1, r, 1, r)          # [c, q, i, w, j]
    b_vec = jnp.broadcast_to(bk, (C, p, r, W, r)).reshape(1, acc_w)

    # ---- Per-generation VMEM budgeting. ----
    vmem_cap = _vmem_capacity_bytes()
    if vmem_limit_bytes is None:
        vmem_limit_bytes = (vmem_cap * 3) // 4                    # 96 MiB on 128-MiB parts, 48 MiB on v7x
    block_budget = min(32 * 1024 * 1024, vmem_cap // 4)           # 32 MiB v5e/v6e, 16 MiB v7x
    g_bytes = int(g_cat.size) * 4
    b_bytes = int(b_vec.size) * 4
    per_row_bytes = (2 * C * in_w * itemsize      # double-buffered input rows
                     + 2 * C * out_w * itemsize   # double-buffered output rows
                     + acc_w * 4)                 # f32 accumulator
    avail = max(per_row_bytes * sub, block_budget - g_bytes - 2 * b_bytes)
    rows_cap = max(sub, avail // per_row_bytes)

    # Keep enough grid steps for both v7x TensorCores and for DMA/compute overlap.
    min_steps = 4
    rows_for_steps = max(sub, Hs // max(1, -(-min_steps // max(N, 1))))
    ths = _pick_row_tile(Hs, min(rows_cap, rows_for_steps), sub)

    xs = x.reshape(N, C, Hs, in_w)                # free contiguous view of NCHW input
    grid = (N, pl.cdiv(Hs, ths))

    flops = 2 * N * H * W * OC * C                # true conv FLOPs (review item: no W inflation)
    bytes_accessed = int(xs.size * itemsize + g_bytes + b_bytes
                         + N * C * Hs * out_w * itemsize)

    def build(single_buffer_consts):
        def const_spec(shape):
            zeros = (lambda n, h: tuple(0 for _ in shape))
            if single_buffer_consts:
                try:
                    return pl.BlockSpec(shape, zeros, pipeline_mode=pl.Buffered(1))
                except Exception:
                    pass
            return pl.BlockSpec(shape, zeros)

        return pl.pallas_call(
            _upsample_shuffle_kernel,
            out_shape=jax.ShapeDtypeStruct((N, C, Hs, out_w), x.dtype),
            grid_spec=pltpu.PrefetchScalarGridSpec(
                num_scalar_prefetch=0,
                grid=grid,
                in_specs=[
                    pl.BlockSpec((1, C, ths, in_w), lambda n, h: (n, 0, h, 0)),
                    const_spec((C, in_w, acc_w)),
                    const_spec((1, acc_w)),
                ],
                out_specs=pl.BlockSpec((1, C, ths, out_w), lambda n, h: (n, 0, h, 0)),
            ),
            compiler_params=pltpu.CompilerParams(
                dimension_semantics=("parallel", "parallel"),
                vmem_limit_bytes=int(vmem_limit_bytes),
            ),
            cost_estimate=pl.CostEstimate(
                flops=flops, transcendentals=0, bytes_accessed=bytes_accessed),
        )

    try:
        out4 = build(True)(xs, g_cat, b_vec)
    except Exception:
        # pipeline_mode / Buffered(1) unsupported on this jax version -> default buffering.
        out4 = build(False)(xs, g_cat, b_vec)

    # (N, C, Hs, p*rWr) and (N, C, H*r, W*r) share row-major element order: free view,
    # not another HBM pass.
    return out4.reshape(N, C, H * r, W * r)


def init_upsample_params(key, n_chan, factor=2, dtype=jnp.float32):
    """Deterministic parameter init matching the module's shapes.

    Conv weight: xavier_normal_-like std = sqrt(2 / (fan_in + fan_out))
    Conv bias:   uniform(-1/sqrt(fan_in), 1/sqrt(fan_in))
    """
    out_chan = n_chan * factor * factor
    kw, kb = jax.random.split(key)
    fan_in = n_chan
    fan_out = out_chan
    std = (2.0 / (fan_in + fan_out)) ** 0.5
    weight = std * jax.random.normal(kw, (out_chan, n_chan, 1, 1), dtype=dtype)
    bound = 1.0 / (fan_in ** 0.5)
    bias = jax.random.uniform(kb, (out_chan,), dtype=dtype,
                              minval=-bound, maxval=bound)
    return weight, bias


def _reference_forward(x_nchw, weight, bias, factor=2):
    """Pure-JAX reference (no Pallas) for sanity checking."""
    N, C, H, W = x_nchw.shape
    r = factor
    OC = C * r * r
    y = jnp.einsum("nchw,oc->nohw", x_nchw, weight.reshape(OC, C)) \
        + bias[None, :, None, None]
    y = y.reshape(N, C, r, r, H, W)
    y = jnp.transpose(y, (0, 1, 4, 2, 5, 3))
    return y.reshape(N, C, H * r, W * r)


if __name__ == "__main__":
    key = jax.random.PRNGKey(0)
    k_x, k_p = jax.random.split(key)

    N, C, H, W = 2, 4, 16, 16
    factor = 2
    x = jax.random.normal(k_x, (N, C, H, W), dtype=jnp.float32)
    weight, bias = init_upsample_params(k_p, C, factor=factor)

    out = upsample_forward(x, weight, bias, factor=factor)
    out = jax.block_until_ready(out)

    ref = _reference_forward(x, weight, bias, factor=factor)
    assert out.shape == (N, C, H * factor, W * factor)
    err = float(jnp.max(jnp.abs(out - ref)))
    assert jnp.allclose(out, ref, atol=1e-4, rtol=1e-4), f"max abs err = {err}"

    print("KERNEL_OK")
</pallas_src>

<mosaic_0001>
module attributes {stable_mosaic.version = 11 : i64} {
  func.func @_upsample_shuffle_kernel(%arg0: i32, %arg1: i32, %arg2: memref<1x4x8x32xf32, #tpu.memory_space<vmem>>, %arg3: memref<4x32x512xf32, #tpu.memory_space<vmem>>, %arg4: memref<1x512xf32, #tpu.memory_space<vmem>>, %arg5: memref<1x4x8x128xf32, #tpu.memory_space<vmem>>) attributes {dimension_semantics = [#tpu.dimension_semantics<parallel>, #tpu.dimension_semantics<parallel>], iteration_bounds = array<i64: 2, 1>, scalar_prefetch = 0 : i64, scratch_operands = 0 : i64, tpu.core_type = #tpu.core_type<tc>, window_params = [{transform_indices = @transform_0, window_bounds = array<i64: 1, 4, 8, 32>}, {pipeline_mode = #tpu.pipeline_mode<synchronous>, transform_indices = @transform_1, window_bounds = array<i64: 4, 32, 512>}, {pipeline_mode = #tpu.pipeline_mode<synchronous>, transform_indices = @transform_2, window_bounds = array<i64: 1, 512>}, {transform_indices = @transform_3, window_bounds = array<i64: 1, 4, 8, 128>}]} {
    %c0 = arith.constant 0 : index
    %c0_0 = arith.constant 0 : index
    %c0_1 = arith.constant 0 : index
    %c0_2 = arith.constant 0 : index
    %0 = vector.load %arg2[%c0, %c0_0, %c0_1, %c0_2] : memref<1x4x8x32xf32, #tpu.memory_space<vmem>>, vector<1x4x8x32xf32>
    %1 = vector.shape_cast %0 : vector<1x4x8x32xf32> to vector<4x8x32xf32>
    %2 = vector.extract_strided_slice %1 {offsets = [0, 0, 0], sizes = [1, 8, 32], strides = [1, 1, 1]} : vector<4x8x32xf32> to vector<1x8x32xf32>
    %3 = vector.shape_cast %2 : vector<1x8x32xf32> to vector<8x32xf32>
    %c0_3 = arith.constant 0 : index
    %c0_4 = arith.constant 0 : index
    %c0_5 = arith.constant 0 : index
    %4 = vector.load %arg3[%c0_3, %c0_4, %c0_5] : memref<4x32x512xf32, #tpu.memory_space<vmem>>, vector<1x32x512xf32>
    %5 = vector.shape_cast %4 : vector<1x32x512xf32> to vector<32x512xf32>
    %cst = arith.constant dense<0.000000e+00> : vector<8x512xf32>
    %6 = tpu.matmul %3, %5, %cst {dimension_numbers = #tpu.dot_dimension_numbers<[1], [0], [0], [1], [0, 0, 1, 1], [], []>} : vector<8x32xf32>, vector<32x512xf32>, vector<8x512xf32> -> vector<8x512xf32>
    %7 = vector.extract_strided_slice %1 {offsets = [1, 0, 0], sizes = [1, 8, 32], strides = [1, 1, 1]} : vector<4x8x32xf32> to vector<1x8x32xf32>
    %8 = vector.shape_cast %7 : vector<1x8x32xf32> to vector<8x32xf32>
    %c1 = arith.constant 1 : index
    %c0_6 = arith.constant 0 : index
    %c0_7 = arith.constant 0 : index
    %9 = vector.load %arg3[%c1, %c0_6, %c0_7] : memref<4x32x512xf32, #tpu.memory_space<vmem>>, vector<1x32x512xf32>
    %10 = vector.shape_cast %9 : vector<1x32x512xf32> to vector<32x512xf32>
    %cst_8 = arith.constant dense<0.000000e+00> : vector<8x512xf32>
    %11 = tpu.matmul %8, %10, %cst_8 {dimension_numbers = #tpu.dot_dimension_numbers<[1], [0], [0], [1], [0, 0, 1, 1], [], []>} : vector<8x32xf32>, vector<32x512xf32>, vector<8x512xf32> -> vector<8x512xf32>
    %12 = arith.addf %6, %11 : vector<8x512xf32>
    %13 = vector.extract_strided_slice %1 {offsets = [2, 0, 0], sizes = [1, 8, 32], strides = [1, 1, 1]} : vector<4x8x32xf32> to vector<1x8x32xf32>
    %14 = vector.shape_cast %13 : vector<1x8x32xf32> to vector<8x32xf32>
    %c2 = arith.constant 2 : index
    %c0_9 = arith.constant 0 : index
    %c0_10 = arith.constant 0 : index
    %15 = vector.load %arg3[%c2, %c0_9, %c0_10] : memref<4x32x512xf32, #tpu.memory_space<vmem>>, vector<1x32x512xf32>
    %16 = vector.shape_cast %15 : vector<1x32x512xf32> to vector<32x512xf32>
    %cst_11 = arith.constant dense<0.000000e+00> : vector<8x512xf32>
    %17 = tpu.matmul %14, %16, %cst_11 {dimension_numbers = #tpu.dot_dimension_numbers<[1], [0], [0], [1], [0, 0, 1, 1], [], []>} : vector<8x32xf32>, vector<32x512xf32>, vector<8x512xf32> -> vector<8x512xf32>
    %18 = arith.addf %12, %17 : vector<8x512xf32>
    %19 = vector.extract_strided_slice %1 {offsets = [3, 0, 0], sizes = [1, 8, 32], strides = [1, 1, 1]} : vector<4x8x32xf32> to vector<1x8x32xf32>
    %20 = vector.shape_cast %19 : vector<1x8x32xf32> to vector<8x32xf32>
    %c3 = arith.constant 3 : index
    %c0_12 = arith.constant 0 : index
    %c0_13 = arith.constant 0 : index
    %21 = vector.load %arg3[%c3, %c0_12, %c0_13] : memref<4x32x512xf32, #tpu.memory_space<vmem>>, vector<1x32x512xf32>
    %22 = vector.shape_cast %21 : vector<1x32x512xf32> to vector<32x512xf32>
    %cst_14 = arith.constant dense<0.000000e+00> : vector<8x512xf32>
    %23 = tpu.matmul %20, %22, %cst_14 {dimension_numbers = #tpu.dot_dimension_numbers<[1], [0], [0], [1], [0, 0, 1, 1], [], []>} : vector<8x32xf32>, vector<32x512xf32>, vector<8x512xf32> -> vector<8x512xf32>
    %24 = arith.addf %18, %23 : vector<8x512xf32>
    %c0_15 = arith.constant 0 : index
    %c0_16 = arith.constant 0 : index
    %25 = vector.load %arg4[%c0_15, %c0_16] : memref<1x512xf32, #tpu.memory_space<vmem>>, vector<1x512xf32>
    %26 = vector.broadcast %25 : vector<1x512xf32> to vector<8x512xf32>
    %27 = arith.addf %24, %26 : vector<8x512xf32>
    %28 = vector.extract_strided_slice %27 {offsets = [0, 0], sizes = [8, 128], strides = [1, 1]} : vector<8x512xf32> to vector<8x128xf32>
    %c0_17 = arith.constant 0 : index
    %c0_18 = arith.constant 0 : index
    %c0_19 = arith.constant 0 : index
    %c0_20 = arith.constant 0 : index
    %29 = vector.load %arg5[%c0_17, %c0_18, %c0_19, %c0_20] : memref<1x4x8x128xf32, #tpu.memory_space<vmem>>, vector<1x1x8x128xf32>
    %30 = vector.shape_cast %29 : vector<1x1x8x128xf32> to vector<8x128xf32>
    %31 = vector.shape_cast %28 : vector<8x128xf32> to vector<1x1x8x128xf32>
    tpu.vector_store %arg5[%c0_17, %c0_18, %c0_19, %c0_20], %31 {strides = array<i32>} : memref<1x4x8x128xf32, #tpu.memory_space<vmem>>, vector<1x1x8x128xf32>,
    %32 = vector.extract_strided_slice %27 {offsets = [0, 128], sizes = [8, 128], strides = [1, 1]} : vector<8x512xf32> to vector<8x128xf32>
    %c0_21 = arith.constant 0 : index
    %c1_22 = arith.constant 1 : index
    %c0_23 = arith.constant 0 : index
    %c0_24 = arith.constant 0 : index
    %33 = vector.load %arg5[%c0_21, %c1_22, %c0_23, %c0_24] : memref<1x4x8x128xf32, #tpu.memory_space<vmem>>, vector<1x1x8x128xf32>
    %34 = vector.shape_cast %33 : vector<1x1x8x128xf32> to vector<8x128xf32>
    %35 = vector.shape_cast %32 : vector<8x128xf32> to vector<1x1x8x128xf32>
    tpu.vector_store %arg5[%c0_21, %c1_22, %c0_23, %c0_24], %35 {strides = array<i32>} : memref<1x4x8x128xf32, #tpu.memory_space<vmem>>, vector<1x1x8x128xf32>,
    %36 = vector.extract_strided_slice %27 {offsets = [0, 256], sizes = [8, 128], strides = [1, 1]} : vector<8x512xf32> to vector<8x128xf32>
    %c0_25 = arith.constant 0 : index
    %c2_26 = arith.constant 2 : index
    %c0_27 = arith.constant 0 : index
    %c0_28 = arith.constant 0 : index
    %37 = vector.load %arg5[%c0_25, %c2_26, %c0_27, %c0_28] : memref<1x4x8x128xf32, #tpu.memory_space<vmem>>, vector<1x1x8x128xf32>
    %38 = vector.shape_cast %37 : vector<1x1x8x128xf32> to vector<8x128xf32>
    %39 = vector.shape_cast %36 : vector<8x128xf32> to vector<1x1x8x128xf32>
    tpu.vector_store %arg5[%c0_25, %c2_26, %c0_27, %c0_28], %39 {strides = array<i32>} : memref<1x4x8x128xf32, #tpu.memory_space<vmem>>, vector<1x1x8x128xf32>,
    %40 = vector.extract_strided_slice %27 {offsets = [0, 384], sizes = [8, 128], strides = [1, 1]} : vector<8x512xf32> to vector<8x128xf32>
    %c0_29 = arith.constant 0 : index
    %c3_30 = arith.constant 3 : index
    %c0_31 = arith.constant 0 : index
    %c0_32 = arith.constant 0 : index
    %41 = vector.load %arg5[%c0_29, %c3_30, %c0_31, %c0_32] : memref<1x4x8x128xf32, #tpu.memory_space<vmem>>, vector<1x1x8x128xf32>
    %42 = vector.shape_cast %41 : vector<1x1x8x128xf32> to vector<8x128xf32>
    %43 = vector.shape_cast %40 : vector<8x128xf32> to vector<1x1x8x128xf32>
    tpu.vector_store %arg5[%c0_29, %c3_30, %c0_31, %c0_32], %43 {strides = array<i32>} : memref<1x4x8x128xf32, #tpu.memory_space<vmem>>, vector<1x1x8x128xf32>,
    return
  }
  func.func @transform_0(%arg0: i32, %arg1: i32) -> (i32, i32, i32, i32) {
    %c0_i32 = arith.constant 0 : i32
    %c0_i32_0 = arith.constant 0 : i32
    %c0_i32_1 = arith.constant 0 : i32
    return %arg0, %c0_i32, %arg1, %c0_i32_0 : i32, i32, i32, i32
  }
  func.func @transform_1(%arg0: i32, %arg1: i32) -> (i32, i32, i32) {
    %c0_i32 = arith.constant 0 : i32
    %c0_i32_0 = arith.constant 0 : i32
    %c0_i32_1 = arith.constant 0 : i32
    %c0_i32_2 = arith.constant 0 : i32
    return %c0_i32, %c0_i32_0, %c0_i32_1 : i32, i32, i32
  }
  func.func @transform_2(%arg0: i32, %arg1: i32) -> (i32, i32) {
    %c0_i32 = arith.constant 0 : i32
    %c0_i32_0 = arith.constant 0 : i32
    %c0_i32_1 = arith.constant 0 : i32
    return %c0_i32, %c0_i32_0 : i32, i32
  }
  func.func @transform_3(%arg0: i32, %arg1: i32) -> (i32, i32, i32, i32) {
    %c0_i32 = arith.constant 0 : i32
    %c0_i32_0 = arith.constant 0 : i32
    %c0_i32_1 = arith.constant 0 : i32
    return %arg0, %c0_i32, %arg1, %c0_i32_0 : i32, i32, i32, i32
  }
}

module attributes {stable_mosaic.version = 11 : i64} {
  func.func @_upsample_shuffle_kernel(%arg0: i32, %arg1: i32, %arg2: memref<1x4x8x32xf32, #tpu.memory_space<vmem>>, %arg3: memref<4x32x512xf32, #tpu.memory_space<vmem>>, %arg4: memref<1x512xf32, #tpu.memory_space<vmem>>, %arg5: memref<1x4x8x128xf32, #tpu.memory_space<vmem>>) attributes {dimension_semantics = [#tpu.dimension_semantics<parallel>, #tpu.dimension_semantics<parallel>], iteration_bounds = array<i64: 2, 1>, scalar_prefetch = 0 : i64, scratch_operands = 0 : i64, tpu.core_type = #tpu.core_type<tc>, window_params = [{transform_indices = @transform_0, window_bounds = array<i64: 1, 4, 8, 32>}, {pipeline_mode = #tpu.pipeline_mode<synchronous>, transform_indices = @transform_1, window_bounds = array<i64: 4, 32, 512>}, {pipeline_mode = #tpu.pipeline_mode<synchronous>, transform_indices = @transform_2, window_bounds = array<i64: 1, 512>}, {transform_indices = @transform_3, window_bounds = array<i64: 1, 4, 8, 128>}]} {
    %c0 = arith.constant 0 : index
    %c0_0 = arith.constant 0 : index
    %c0_1 = arith.constant 0 : index
    %c0_2 = arith.constant 0 : index
    %0 = vector.load %arg2[%c0, %c0_0, %c0_1, %c0_2] : memref<1x4x8x32xf32, #tpu.memory_space<vmem>>, vector<1x4x8x32xf32>
    %1 = vector.shape_cast %0 : vector<1x4x8x32xf32> to vector<4x8x32xf32>
    %2 = vector.extract_strided_slice %1 {offsets = [0, 0, 0], sizes = [1, 8, 32], strides = [1, 1, 1]} : vector<4x8x32xf32> to vector<1x8x32xf32>
    %3 = vector.shape_cast %2 : vector<1x8x32xf32> to vector<8x32xf32>
    %c0_3 = arith.constant 0 : index
    %c0_4 = arith.constant 0 : index
    %c0_5 = arith.constant 0 : index
    %4 = vector.load %arg3[%c0_3, %c0_4, %c0_5] : memref<4x32x512xf32, #tpu.memory_space<vmem>>, vector<1x32x512xf32>
    %5 = vector.shape_cast %4 : vector<1x32x512xf32> to vector<32x512xf32>
    %cst = arith.constant dense<0.000000e+00> : vector<8x512xf32>
    %6 = tpu.matmul %3, %5, %cst {dimension_numbers = #tpu.dot_dimension_numbers<[1], [0], [0], [1], [0, 0, 1, 1], [], []>} : vector<8x32xf32>, vector<32x512xf32>, vector<8x512xf32> -> vector<8x512xf32>
    %7 = vector.extract_strided_slice %1 {offsets = [1, 0, 0], sizes = [1, 8, 32], strides = [1, 1, 1]} : vector<4x8x32xf32> to vector<1x8x32xf32>
    %8 = vector.shape_cast %7 : vector<1x8x32xf32> to vector<8x32xf32>
    %c1 = arith.constant 1 : index
    %c0_6 = arith.constant 0 : index
    %c0_7 = arith.constant 0 : index
    %9 = vector.load %arg3[%c1, %c0_6, %c0_7] : memref<4x32x512xf32, #tpu.memory_space<vmem>>, vector<1x32x512xf32>
    %10 = vector.shape_cast %9 : vector<1x32x512xf32> to vector<32x512xf32>
    %cst_8 = arith.constant dense<0.000000e+00> : vector<8x512xf32>
    %11 = tpu.matmul %8, %10, %cst_8 {dimension_numbers = #tpu.dot_dimension_numbers<[1], [0], [0], [1], [0, 0, 1, 1], [], []>} : vector<8x32xf32>, vector<32x512xf32>, vector<8x512xf32> -> vector<8x512xf32>
    %12 = arith.addf %6, %11 : vector<8x512xf32>
    %13 = vector.extract_strided_slice %1 {offsets = [2, 0, 0], sizes = [1, 8, 32], strides = [1, 1, 1]} : vector<4x8x32xf32> to vector<1x8x32xf32>
    %14 = vector.shape_cast %13 : vector<1x8x32xf32> to vector<8x32xf32>
    %c2 = arith.constant 2 : index
    %c0_9 = arith.constant 0 : index
    %c0_10 = arith.constant 0 : index
    %15 = vector.load %arg3[%c2, %c0_9, %c0_10] : memref<4x32x512xf32, #tpu.memory_space<vmem>>, vector<1x32x512xf32>
    %16 = vector.shape_cast %15 : vector<1x32x512xf32> to vector<32x512xf32>
    %cst_11 = arith.constant dense<0.000000e+00> : vector<8x512xf32>
    %17 = tpu.matmul %14, %16, %cst_11 {dimension_numbers = #tpu.dot_dimension_numbers<[1], [0], [0], [1], [0, 0, 1, 1], [], []>} : vector<8x32xf32>, vector<32x512xf32>, vector<8x512xf32> -> vector<8x512xf32>
    %18 = arith.addf %12, %17 : vector<8x512xf32>
    %19 = vector.extract_strided_slice %1 {offsets = [3, 0, 0], sizes = [1, 8, 32], strides = [1, 1, 1]} : vector<4x8x32xf32> to vector<1x8x32xf32>
    %20 = vector.shape_cast %19 : vector<1x8x32xf32> to vector<8x32xf32>
    %c3 = arith.constant 3 : index
    %c0_12 = arith.constant 0 : index
    %c0_13 = arith.constant 0 : index
    %21 = vector.load %arg3[%c3, %c0_12, %c0_13] : memref<4x32x512xf32, #tpu.memory_space<vmem>>, vector<1x32x512xf32>
    %22 = vector.shape_cast %21 : vector<1x32x512xf32> to vector<32x512xf32>
    %cst_14 = arith.constant dense<0.000000e+00> : vector<8x512xf32>
    %23 = tpu.matmul %20, %22, %cst_14 {dimension_numbers = #tpu.dot_dimension_numbers<[1], [0], [0], [1], [0, 0, 1, 1], [], []>} : vector<8x32xf32>, vector<32x512xf32>, vector<8x512xf32> -> vector<8x512xf32>
    %24 = arith.addf %18, %23 : vector<8x512xf32>
    %c0_15 = arith.constant 0 : index
    %c0_16 = arith.constant 0 : index
    %25 = vector.load %arg4[%c0_15, %c0_16] : memref<1x512xf32, #tpu.memory_space<vmem>>, vector<1x512xf32>
    %26 = vector.broadcast %25 : vector<1x512xf32> to vector<8x512xf32>
    %27 = arith.addf %24, %26 : vector<8x512xf32>
    %28 = vector.extract_strided_slice %27 {offsets = [0, 0], sizes = [8, 128], strides = [1, 1]} : vector<8x512xf32> to vector<8x128xf32>
    %c0_17 = arith.constant 0 : index
    %c0_18 = arith.constant 0 : index
    %c0_19 = arith.constant 0 : index
    %c0_20 = arith.constant 0 : index
    %29 = vector.load %arg5[%c0_17, %c0_18, %c0_19, %c0_20] : memref<1x4x8x128xf32, #tpu.memory_space<vmem>>, vector<1x1x8x128xf32>
    %30 = vector.shape_cast %29 : vector<1x1x8x128xf32> to vector<8x128xf32>
    %31 = vector.shape_cast %28 : vector<8x128xf32> to vector<1x1x8x128xf32>
    tpu.vector_store %arg5[%c0_17, %c0_18, %c0_19, %c0_20], %31 {strides = array<i32>} : memref<1x4x8x128xf32, #tpu.memory_space<vmem>>, vector<1x1x8x128xf32>,
    %32 = vector.extract_strided_slice %27 {offsets = [0, 128], sizes = [8, 128], strides = [1, 1]} : vector<8x512xf32> to vector<8x128xf32>
    %c0_21 = arith.constant 0 : index
    %c1_22 = arith.constant 1 : index
    %c0_23 = arith.constant 0 : index
    %c0_24 = arith.constant 0 : index
    %33 = vector.load %arg5[%c0_21, %c1_22, %c0_23, %c0_24] : memref<1x4x8x128xf32, #tpu.memory_space<vmem>>, vector<1x1x8x128xf32>
    %34 = vector.shape_cast %33 : vector<1x1x8x128xf32> to vector<8x128xf32>
    %35 = vector.shape_cast %32 : vector<8x128xf32> to vector<1x1x8x128xf32>
    tpu.vector_store %arg5[%c0_21, %c1_22, %c0_23, %c0_24], %35 {strides = array<i32>} : memref<1x4x8x128xf32, #tpu.memory_space<vmem>>, vector<1x1x8x128xf32>,
    %36 = vector.extract_strided_slice %27 {offsets = [0, 256], sizes = [8, 128], strides = [1, 1]} : vector<8x512xf32> to vector<8x128xf32>
    %c0_25 = arith.constant 0 : index
    %c2_26 = arith.constant 2 : index
    %c0_27 = arith.constant 0 : index
    %c0_28 = arith.constant 0 : index
    %37 = vector.load %arg5[%c0_25, %c2_26, %c0_27, %c0_28] : memref<1x4x8x128xf32, #tpu.memory_space<vmem>>, vector<1x1x8x128xf32>
    %38 = vector.shape_cast %37 : vector<1x1x8x128xf32> to vector<8x128xf32>
    %39 = vector.shape_cast %36 : vector<8x128xf32> to vector<1x1x8x128xf32>
    tpu.vector_store %arg5[%c0_25, %c2_26, %c0_27, %c0_28], %39 {strides = array<i32>} : memref<1x4x8x128xf32, #tpu.memory_space<vmem>>, vector<1x1x8x128xf32>,
    %40 = vector.extract_strided_slice %27 {offsets = [0, 384], sizes = [8, 128], strides = [1, 1]} : vector<8x512xf32> to vector<8x128xf32>
    %c0_29 = arith.constant 0 : index
    %c3_30 = arith.constant 3 : index
    %c0_31 = arith.constant 0 : index
    %c0_32 = arith.constant 0 : index
    %41 = vector.load %arg5[%c0_29, %c3_30, %c0_31, %c0_32] : memref<1x4x8x128xf32, #tpu.memory_space<vmem>>, vector<1x1x8x128xf32>
    %42 = vector.shape_cast %41 : vector<1x1x8x128xf32> to vector<8x128xf32>
    %43 = vector.shape_cast %40 : vector<8x128xf32> to vector<1x1x8x128xf32>
    tpu.vector_store %arg5[%c0_29, %c3_30, %c0_31, %c0_32], %43 {strides = array<i32>} : memref<1x4x8x128xf32, #tpu.memory_space<vmem>>, vector<1x1x8x128xf32>,
    return
  }
  func.func @transform_0(%arg0: i32, %arg1: i32) -> (i32, i32, i32, i32) {
    %c0_i32 = arith.constant 0 : i32
    %c0_i32_0 = arith.constant 0 : i32
    %c0_i32_1 = arith.constant 0 : i32
    return %arg0, %c0_i32, %arg1, %c0_i32_0 : i32, i32, i32, i32
  }
  func.func @transform_1(%arg0: i32, %arg1: i32) -> (i32, i32, i32) {
    %c0_i32 = arith.constant 0 : i32
    %c0_i32_0 = arith.constant 0 : i32
    %c0_i32_1 = arith.constant 0 : i32
    %c0_i32_2 = arith.constant 0 : i32
    return %c0_i32, %c0_i32_0, %c0_i32_1 : i32, i32, i32
  }
  func.func @transform_2(%arg0: i32, %arg1: i32) -> (i32, i32) {
    %c0_i32 = arith.constant 0 : i32
    %c0_i32_0 = arith.constant 0 : i32
    %c0_i32_1 = arith.constant 0 : i32
    return %c0_i32, %c0_i32_0 : i32, i32
  }
  func.func @transform_3(%arg0: i32, %arg1: i32) -> (i32, i32, i32, i32) {
    %c0_i32 = arith.constant 0 : i32
    %c0_i32_0 = arith.constant 0 : i32
    %c0_i32_1 = arith.constant 0 : i32
    return %arg0, %c0_i32, %arg1, %c0_i32_0 : i32, i32, i32, i32
  }
}

</mosaic_0001>

<bundles_post_ra>
// kernel: tpu_custom_call.1
= control target key start
LH: loop header
LB: loop body
LE: loop exit
PB: predicated region body
PF: predicated region fallthrough
CT: control target
= control target key end

     0   :  { %s1308_s0 = inlined_call_operand.hbm [shape: f32[2,4,8,32], index: 0, kind: input, shape index: {}]   ;;  %s1309_s1 = inlined_call_operand.hbm [shape: f32[4,32,512], index: 1, kind: input, shape index: {}]   ;;  %s1310_s2 = inlined_call_operand.hbm [shape: f32[1,512], index: 2, kind: input, shape index: {}]   ;;  %s1311_s3 = inlined_call_operand.hbm [shape: f32[2,4,8,128], index: 3, kind: output, shape index: {}]  }
   0x1   :  { %1312 = sst [smem:[#allocation12_spill]] %s1309_s1 }
   0x2   :  { %8 = vsyncpa [#allocation3], 0 }
   0x3   :  { %10 = vsyncpa [#allocation3 + $0x1], 0 }
   0x4   :  { %11 = vsyncpa [#allocation6], 0 }
   0x5   :  { %12 = vsyncpa [#allocation4], 0 }
   0x6   :  { %14 = vsyncpa [#allocation4 + $0x1], 0  ;;  %s1128_s12 = smov 0   ;;  %s1130_s13 = smov 0  }
   0x7   :  { %s1132_s14 = smov 0   ;;  %s1134_s15 = smov 0  }
   0x8   :  { %s1136_s16 = smov 0   ;;  %s1138_s17 = smov 0  }
   0x9 LB: > { %s793_s18 = sadd.s32 4294967295, %s1098_s17   ;;  %s794_s19 = sadd.s32 4294967294, %s1098_s17   ;;  %s1098_s17 = sphi %s1138_s17, %s20_s17   ;;  %s1094_s16 = sphi %s1136_s16, %s1325_s16   ;;  %s1090_s15 = sphi %s1134_s15, %s1324_s15   ;;  %s1086_s14 = sphi %s1132_s14, %s1323_s14   ;;  %s1082_s13 = sphi %s1130_s13, %s1322_s13   ;;  %s1078_s12 = sphi %s1128_s12, %s1321_s12  }
   0xa   : > { %p54_p0 = scmp.ne.s32.totalorder %s1082_s13, %s1078_s12  ;;  %p1162_p1 = scmp.eq.s32.totalorder %s793_s18, 0 }
   0xb   : > { %p1166_p2 = scmp.eq.s32.totalorder %s793_s18, 1  ;;  %p128_p3 = scmp.eq.s32.totalorder %s794_s19, 1 }
   0xc   : > { %p1172_p4 = por %p1162_p1, %p54_p0  ;;  %p795_p5 = scmp.ge.s32.totalorder %s1098_s17, 1 }
   0xd   : > { %p1177_p6 = por %p128_p3, %p54_p0  ;;  %p135_p7 = scmp.lt.s32.totalorder %s1098_s17, 3 }
   0xe   : > { %s1317_s1 = sld [smem:[#allocation12_spill]]  ;;  %s1100_s28 = smov [#allocation5]  }
   0xf   : > { %p1185_p8 = pnand %p795_p5, %p135_p7  ;;  %s148_s29 = sshll.u32 %s1100_s28, 4  ;;  %s149_s29 = int_to_ptr.vmem [resolvable:$true] %s148_s29 }
  0x10   : > { %p798_p11 = scmp.ge.s32.totalorder %s1098_s17, 2  ;;  %s161_s5 = sshll.u32 %s1310_s2, 4  ;;  %s162_s5 = int_to_ptr.hbm [resolvable:$true] %s161_s5 }
  0x11   : > { %p845_p9 = pneg %p1185_p8  ;;  %s1101_s6 = smov 512  }
  0x12   : > { %s1102_s7 = smov 32   ;;  %s1103_s8 = smov [#allocation7]  }
  0x13   : > { %p846_p10 = pnand %p845_p9, %p1162_p1  ;;  %s163_s9 = sshll.u32 %s1103_s8, 4  ;;  %s164_s9 = int_to_ptr.vmem [resolvable:$true] %s163_s9 }
  0x14   : > { %s146_s26 = sshll.u32 %s1317_s1, 4  ;;  %s32_s10 = sadd.s32 1, %s1094_s16  ;;  %s147_s26 = int_to_ptr.hbm [resolvable:$true] %s146_s26 }
  0x15   : > { %848 = dma.hbm_to_vmem [thread:$0]  (!%p846_p10), %s147_s26, 8192, %s149_s29, [#allocation6], %s1101_s6, %s1101_s6, %s1102_s7  }
  0x16   : > { %851 = dma.hbm_to_vmem [thread:$0]  (!%p846_p10), %s162_s5, 64, %s164_s9, [#allocation6]  }
  0x17   : > { %s41_s11 = sadd.s32 1, %s1086_s14  ;;  %p34_p12 = scmp.ge.s32.totalorder %s32_s10, 2 }
  0x18   : > { %p48_p13 = scmp.ne.s32.totalorder %s1086_s14, %s1082_s13  ;;  %p49_p0 = scmp.eq.s32.totalorder %s1098_s17, 0 }
  0x19   : > { %p862_p3 = scmp.lt.s32.totalorder %s1098_s17, 2  ;;  %s1327_s10 = smov (%p34_p12, %s32_s10), 0 }
  0x1a   : > { %p1205_p5 = por %p49_p0, %p48_p13  ;;  %p1211_p7 = por %p1166_p2, %p48_p13 }
  0x1b   : > { %s36_s24 = ssub.s32 %s1094_s16, %s1327_s10  ;;  %s174_s25 = sand.u32 1, %s1086_s14  }
  0x1c   : > { %p39_p9 = scmp.eq.s32.totalorder %s36_s24, 0  ;;  %s799_s26 = sshll.u32 %s174_s25, 5 }
  0x1d   : > { %s831_s28 = sshll.u32 %s1094_s16, 5  ;;  %s178_s7 = scalar_lea.vmem [#allocation2], %s799_s26 }
  0x1e   : > { %s1220_s29 = scalar_select %p39_p9, %s1086_s14, %s41_s11  }
  0x1f   : > { %s184_s5 = scalar_lea.hbm %s1308_s0, %s831_s28  ;;  %s187_s8 = sshll.u32 %s178_s7, 4  ;;  %s188_s8 = int_to_ptr.vmem [resolvable:$true] %s187_s8 }
  0x20   : > { %s185_s6 = sshll.u32 %s184_s5, 4  ;;  %p853_p2 = pnand %p862_p3, %p1205_p5  ;;  %s186_s6 = int_to_ptr.hbm [resolvable:$true] %s185_s6 }
  0x21   : > { %s175_s21 = scalar_lea.sflag [#allocation3], %s174_s25  ;;  %s1104_s9 = smov 128  }
  0x22   : > { %s1105_s1 = smov 8   ;;  %199 = sbr.rel (%p1185_p8) target bundleno = 223 (0xdf), region = 32 }
  0x23   : > { %855 = dma.hbm_to_vmem [thread:$0]  (!%p853_p2), %s186_s6, 512, %s188_s8, %s175_s21, %s1104_s9, %s1104_s9, %s1105_s1  }
  0x24   : > { %s1232_s11 = sand.u32 (!%p1185_p8), 1, %s1082_s13  }
  0x25   : > { %s803_s24 = sshll.u32 (!%p1185_p8), %s1232_s11, 5  ;;  %s202_s26 = scalar_lea.sflag (!%p1185_p8), [#allocation3], %s1232_s11 }
  0x26   : > { %s1238_s18 = scalar_lea.vmem (!%p1185_p8), [#allocation2], %s803_s24 }
  0x27   : > { %1065 = dma.done.wait (%p1172_p4), %s202_s26, 512  }
  0x28   : > { %1067 = vsyncadd (%p1172_p4), %s202_s26, 4294966784 }
  0x29   : > { %1069 = dma.done.wait (%p1162_p1), [#allocation6], 8256  }
  0x2a   : > { %1071 = vsyncadd (%p1162_p1), [#allocation6], 4294959040  ;;  %v272_v0 = vld [vmem:[#allocation5 + $0xe0] sm:$0xff]  ;;  %v273_v1 = vld [vmem:[#allocation5 + $0xe8] sm:$0xff]  ;;  %vm276_vm0 = vcmask 261120   ;;  %s832_s1 = sshll.u32 %s1090_s15, 5 }
  0x2b   : > { %v274_v2 = vld [vmem:[#allocation5 + $0xf0] sm:$0xff]  ;;  %292 = vmatpush.msra.mxu0 %v272_v0  ;;  %312 = vmatpush.msra.mxu1 %v273_v1  ;;  %v275_v3 = vld [vmem:[#allocation5 + $0xf8] sm:$0xff]  ;;  %v268_v4 = vld [vmem:[#allocation5 + $0xc0] sm:$0xff]  ;;  %s685_s27 = scalar_lea.hbm %s1311_s3, %s832_s1  ;;  %s238_s25 = scalar_lea.vmem [#allocation8], %s803_s24 }
  0x2c   : > { %v269_v5 = vld [vmem:[#allocation5 + $0xc8] sm:$0xff]  ;;  %332 = vmatpush.msra.mxu2 %v274_v2  ;;  %352 = vmatpush.msra.mxu3 %v275_v3  ;;  %v270_v6 = vld [vmem:[#allocation5 + $0xd0] sm:$0xff]  ;;  %v271_v7 = vld [vmem:[#allocation5 + $0xd8] sm:$0xff]  ;;  %s686_s28 = sshll.u32 %s238_s25, 4  ;;  %s688_s15 = sshll.u32 %s685_s27, 4  ;;  %s687_s28 = int_to_ptr.vmem [resolvable:$true] %s686_s28  ;;  %s689_s15 = int_to_ptr.hbm [resolvable:$true] %s688_s15 }
  0x2d   : > { %v264_v8 = vld [vmem:[#allocation5 + $0xa0] sm:$0xff]  ;;  %293 = vmatpush.msra.mxu0 %v268_v4  ;;  %313 = vmatpush.msra.mxu1 %v269_v5  ;;  %v265_v9 = vld [vmem:[#allocation5 + $0xa8] sm:$0xff]  ;;  %v266_v10 = vld [vmem:[#allocation5 + $0xb0] sm:$0xff]  ;;  %s673_s30 = scalar_lea.sflag [#allocation4], %s1232_s11  ;;  %s1026_s4 = sshra.s32 %s689_s15, 4  ;;  %s1027_s4 = int_to_ptr.hbm [resolvable:$true] %s1026_s4 }
  0x2e   : > { %v267_v11 = vld [vmem:[#allocation5 + $0xb8] sm:$0xff]  ;;  %333 = vmatpush.msra.mxu2 %v270_v6  ;;  %353 = vmatpush.msra.mxu3 %v271_v7  ;;  %v260_v12 = vld [vmem:[#allocation5 + $0x80] sm:$0xff]  ;;  %v261_v13 = vld [vmem:[#allocation5 + $0x88] sm:$0xff]  ;;  %s1028_s5 = scalar_lea.hbm %s1027_s4, 32  ;;  %s1032_s8 = scalar_lea.hbm %s1311_s3, 64 }
  0x2f   : > { %294 = vmatpush.msra.mxu0 %v264_v8  ;;  %314 = vmatpush.msra.mxu1 %v265_v9  ;;  %v262_v14 = vld [vmem:[#allocation5 + $0x90] sm:$0xff]  ;;  %v263_v15 = vld [vmem:[#allocation5 + $0x98] sm:$0xff]  ;;  %v240_v16 = vld [vmem:[%s1238_s18 + $0x8] sm:$0xff]  ;;  %p1029_p1 = scmp.ne.s32.totalorder %s1027_s4, %s1028_s5  ;;  %p1033_p10 = scmp.lt.s32.totalorder %s1027_s4, %s1311_s3 }
  0x30   : > { %334 = vmatpush.msra.mxu2 %v266_v10  ;;  %354 = vmatpush.msra.mxu3 %v267_v11  ;;  %v257_v17 = vld [vmem:[#allocation5 + $0x70] sm:$0xff]  ;;  %v258_v18 = vld [vmem:[#allocation5 + $0x78] sm:$0xff]  ;;  %v255_v19 = vld [vmem:[#allocation5 + $0x60] sm:$0xff]  ;;  %p1034_p12 = scmp.lt.s32.totalorder %s1032_s8, %s1028_s5 }
  0x31   : > { %295 = vmatpush.msra.mxu0 %v260_v12  ;;  %315 = vmatpush.msra.mxu1 %v261_v13  ;;  %v256_v20 = vld [vmem:[#allocation5 + $0x68] sm:$0xff]  ;;  %v253_v21 = vld [vmem:[#allocation5 + $0x50] sm:$0xff]  ;;  %v254_v22 = vld [vmem:[#allocation5 + $0x58] sm:$0xff]  ;;  %p1030_p4 = pnand %p1029_p1, %p1211_p7 }
  0x32   : > { %335 = vmatpush.msra.mxu2 %v262_v14  ;;  %355 = vmatpush.msra.mxu3 %v263_v15  ;;  %v251_v23 = vld [vmem:[#allocation5 + $0x40] sm:$0xff]  ;;  %v252_v24 = vld [vmem:[#allocation5 + $0x48] sm:$0xff]  ;;  %v249_v25 = vld [vmem:[#allocation5 + $0x30] sm:$0xff]  ;;  %p1035_p13 = por %p1034_p12, %p1033_p10 }
  0x33   : > { %807 = vmatmul.msk.f32.vlgmr.msra.gmra.mxu0 %vm276_vm0, %v240_v16  ;;  %808 = vmatmul.msk.f32.vlgmr.msra.gmra.mxu1 %vm276_vm0, %v240_v16  ;;  %v250_v26 = vld [vmem:[#allocation5 + $0x38] sm:$0xff]  ;;  %v247_v27 = vld [vmem:[#allocation5 + $0x20] sm:$0xff]  ;;  %v248_v28 = vld [vmem:[#allocation5 + $0x28] sm:$0xff]  ;;  %p1031_p8 = pneg %p1030_p4 }
  0x34   : > { %809 = vmatmul.msk.f32.vlgmr.msra.gmra.mxu2 %vm276_vm0, %v240_v16  ;;  %810 = vmatmul.msk.f32.vlgmr.msra.gmra.mxu3 %vm276_vm0, %v240_v16  ;;  %v245_v29 = vld [vmem:[#allocation5 + $0x10] sm:$0xff]  ;;  %v246_v30 = vld [vmem:[#allocation5 + $0x18] sm:$0xff]  ;;  %v243_v31 = vld [vmem:[#allocation5] sm:$0xff] }
  0x35   : > { %415 = vmatpush.msrb.mxu2 %v257_v17  ;;  %435 = vmatpush.msrb.mxu3 %v258_v18  ;;  %v244_v32 = vld [vmem:[#allocation5 + $0x8] sm:$0xff]  ;;  %v239_v33 = vld [vmem:[%s1238_s18] sm:$0xff]  ;;  %v458_v34 = vld [vmem:[#allocation5 + $0x170] sm:$0xff]  ;;  %p1036_p0 = pnand %p1035_p13, %p1031_p8 }
  0x36   : > { %375 = vmatpush.msrb.mxu0 %v255_v19  ;;  %395 = vmatpush.msrb.mxu1 %v256_v20  ;;  %v459_v35 = vld [vmem:[#allocation5 + $0x178] sm:$0xff]  ;;  %v456_v36 = vld [vmem:[#allocation5 + $0x160] sm:$0xff]  ;;  %v457_v37 = vld [vmem:[#allocation5 + $0x168] sm:$0xff] }
  0x37   : > { %416 = vmatpush.msrb.mxu2 %v253_v21  ;;  %436 = vmatpush.msrb.mxu3 %v254_v22  ;;  %v454_v38 = vld [vmem:[#allocation5 + $0x150] sm:$0xff]  ;;  %v455_v39 = vld [vmem:[#allocation5 + $0x158] sm:$0xff]  ;;  %v452_v40 = vld [vmem:[#allocation5 + $0x140] sm:$0xff] }
  0x38   : > { %376 = vmatpush.msrb.mxu0 %v251_v23  ;;  %396 = vmatpush.msrb.mxu1 %v252_v24  ;;  %v453_v41 = vld [vmem:[#allocation5 + $0x148] sm:$0xff]  ;;  %v450_v42 = vld [vmem:[#allocation5 + $0x130] sm:$0xff]  ;;  %v451_v43 = vld [vmem:[#allocation5 + $0x138] sm:$0xff] }
  0x39   : > { %417 = vmatpush.msrb.mxu2 %v249_v25  ;;  %437 = vmatpush.msrb.mxu3 %v250_v26  ;;  %v448_v44 = vld [vmem:[#allocation5 + $0x120] sm:$0xff]  ;;  %v449_v45 = vld [vmem:[#allocation5 + $0x128] sm:$0xff]  ;;  %v446_v46 = vld [vmem:[#allocation5 + $0x110] sm:$0xff] }
  0x3a   : > { %377 = vmatpush.msrb.mxu0 %v247_v27  ;;  %397 = vmatpush.msrb.mxu1 %v248_v28  ;;  %v447_v47 = vld [vmem:[#allocation5 + $0x118] sm:$0xff]  ;;  %v444_v48 = vld [vmem:[#allocation5 + $0x100] sm:$0xff]  ;;  %v445_v49 = vld [vmem:[#allocation5 + $0x108] sm:$0xff] }
  0x3b   : > { %418 = vmatpush.msrb.mxu2 %v245_v29  ;;  %438 = vmatpush.msrb.mxu3 %v246_v30  ;;  %v241_v50 = vld [vmem:[%s1238_s18 + $0x10] sm:$0xff]  ;;  %v563_v52 = vld [vmem:[#allocation5 + $0x1f8] sm:$0xff]  ;;  %v560_v53 = vld [vmem:[#allocation5 + $0x1e0] sm:$0xff] }
  0x3c   : > { %378 = vmatpush.msrb.mxu0 %v243_v31  ;;  %398 = vmatpush.msrb.mxu1 %v244_v32  ;;  %v562_v51 = vld [vmem:[#allocation5 + $0x1f0] sm:$0xff]  ;;  %v561_v54 = vld [vmem:[#allocation5 + $0x1e8] sm:$0xff]  ;;  %v559_v56 = vld [vmem:[#allocation5 + $0x1d8] sm:$0xff] }
  0x3d   : > { %811 = vmatmul.msk.f32.vlgmr.msrb.gmra.mxu0 %vm276_vm0, %v239_v33  ;;  %812 = vmatmul.msk.f32.vlgmr.msrb.gmra.mxu1 %vm276_vm0, %v239_v33  ;;  %v558_v55 = vld [vmem:[#allocation5 + $0x1d0] sm:$0xff]  ;;  %v556_v57 = vld [vmem:[#allocation5 + $0x1c0] sm:$0xff]  ;;  %v557_v58 = vld [vmem:[#allocation5 + $0x1c8] sm:$0xff] }
  0x3e   : > { %813 = vmatmul.msk.f32.vlgmr.msrb.gmra.mxu2 %vm276_vm0, %v239_v33  ;;  %814 = vmatmul.msk.f32.vlgmr.msrb.gmra.mxu3 %vm276_vm0, %v239_v33  ;;  %v554_v59 = vld [vmem:[#allocation5 + $0x1b0] sm:$0xff]  ;;  %v555_v60 = vld [vmem:[#allocation5 + $0x1b8] sm:$0xff]  ;;  %v552_v61 = vld [vmem:[#allocation5 + $0x1a0] sm:$0xff] }
  0x3f   : > { %515 = vmatpush.msra.mxu2 %v458_v34  ;;  %535 = vmatpush.msra.mxu3 %v459_v35  ;;  %v553_v62 = vld [vmem:[#allocation5 + $0x1a8] sm:$0xff]  ;;  %v550_v63 = vld [vmem:[#allocation5 + $0x190] sm:$0xff]  ;;  %v551_v0 = vld [vmem:[#allocation5 + $0x198] sm:$0xff] }
  0x40   : > { %475 = vmatpush.msra.mxu0 %v456_v36  ;;  %495 = vmatpush.msra.mxu1 %v457_v37  ;;  %v548_v1 = vld [vmem:[#allocation5 + $0x180] sm:$0xff]  ;;  %v549_v2 = vld [vmem:[#allocation5 + $0x188] sm:$0xff]  ;;  %v242_v3 = vld [vmem:[%s1238_s18 + $0x18] sm:$0xff] }
  0x41   : > { %516 = vmatpush.msra.mxu2 %v454_v38  ;;  %536 = vmatpush.msra.mxu3 %v455_v39  ;;  %v651_v14 = vld [vmem:[#allocation7] sm:$0xf] }
  0x42   : > { %476 = vmatpush.msra.mxu0 %v452_v40  ;;  %496 = vmatpush.msra.mxu1 %v453_v41  ;;  %v653_v21 = vperm.slane %v651_v14, 0  ;;  %v654_v22 = vperm.slane %v651_v14, 1  ;;  %v655_v33 = vperm.slane %v651_v14, 2  ;;  %v656_v34 = vperm.slane %v651_v14, 3 }
  0x43   : > { %517 = vmatpush.msra.mxu2 %v450_v42  ;;  %537 = vmatpush.msra.mxu3 %v451_v43 }
  0x44   : > { %477 = vmatpush.msra.mxu0 %v448_v44  ;;  %497 = vmatpush.msra.mxu1 %v449_v45 }
  0x45   : > { %518 = vmatpush.msra.mxu2 %v446_v46  ;;  %538 = vmatpush.msra.mxu3 %v447_v47 }
  0x46   : > { %478 = vmatpush.msra.mxu0 %v444_v48  ;;  %498 = vmatpush.msra.mxu1 %v445_v49 }
  0x47   : > { %815 = vmatmul.msk.f32.vlgmr.msra.gmra.mxu0 %vm276_vm0, %v241_v50  ;;  %816 = vmatmul.msk.f32.vlgmr.msra.gmra.mxu1 %vm276_vm0, %v241_v50 }
  0x48   : > { %817 = vmatmul.msk.f32.vlgmr.msra.gmra.mxu2 %vm276_vm0, %v241_v50  ;;  %818 = vmatmul.msk.f32.vlgmr.msra.gmra.mxu3 %vm276_vm0, %v241_v50 }
  0x49   : > { %619 = vmatpush.msrb.mxu2 %v562_v51  ;;  %639 = vmatpush.msrb.mxu3 %v563_v52 }
  0x4a   : > { %579 = vmatpush.msrb.mxu0 %v560_v53  ;;  %599 = vmatpush.msrb.mxu1 %v561_v54 }
  0x4b   : > { %620 = vmatpush.msrb.mxu2 %v558_v55  ;;  %640 = vmatpush.msrb.mxu3 %v559_v56 }
  0x4c   : > { %580 = vmatpush.msrb.mxu0 %v556_v57  ;;  %600 = vmatpush.msrb.mxu1 %v557_v58 }
  0x4d   : > { %621 = vmatpush.msrb.mxu2 %v554_v59  ;;  %641 = vmatpush.msrb.mxu3 %v555_v60 }
  0x4e   : > { %581 = vmatpush.msrb.mxu0 %v552_v61  ;;  %601 = vmatpush.msrb.mxu1 %v553_v62 }
  0x4f   : > { %622 = vmatpush.msrb.mxu2 %v550_v63  ;;  %642 = vmatpush.msrb.mxu3 %v551_v0 }
  0x50   : > { %582 = vmatpush.msrb.mxu0 %v548_v1  ;;  %602 = vmatpush.msrb.mxu1 %v549_v2 }
  0x51   : > { %819 = vmatmul.msk.f32.vlgmr.msrb.gmra.mxu0 %vm276_vm0, %v242_v3  ;;  %820 = vmatmul.msk.f32.vlgmr.msrb.gmra.mxu1 %vm276_vm0, %v242_v3 }
  0x52   : > { %821 = vmatmul.msk.f32.vlgmr.msrb.gmra.mxu2 %vm276_vm0, %v242_v3  ;;  %822 = vmatmul.msk.f32.vlgmr.msrb.gmra.mxu3 %vm276_vm0, %v242_v3 }
  0xb0   : > { %v297_v4 = vpop.f32.mrf.mxu0  ;;  %v317_v5 = vpop.f32.mrf.mxu1 }
  0xb7   : > { %v337_v6 = vpop.f32.mrf.mxu2  ;;  %v357_v7 = vpop.f32.mrf.mxu3 }
  0xba   : > { %v380_v8 = vpop.f32.mrf.mxu0  ;;  %v400_v9 = vpop.f32.mrf.mxu1 }
  0xbb   : > { %v381_v15 = vadd.f32 %v380_v8, %v297_v4  ;;  %v401_v16 = vadd.f32 %v400_v9, %v317_v5 }
  0xc1   : > { %v420_v10 = vpop.f32.mrf.mxu2  ;;  %v440_v11 = vpop.f32.mrf.mxu3 }
  0xc2   : > { %v421_v29 = vadd.f32 %v420_v10, %v337_v6  ;;  %v441_v30 = vadd.f32 %v440_v11, %v357_v7 }
  0xc4   : > { %v480_v12 = vpop.f32.mrf.mxu0  ;;  %v500_v13 = vpop.f32.mrf.mxu1 }
  0xc5   : > { %v543_v19 = vadd.f32 %v480_v12, %v381_v15  ;;  %v544_v20 = vadd.f32 %v500_v13, %v401_v16 }
  0xcb   : > { %v520_v17 = vpop.f32.mrf.mxu2  ;;  %v540_v18 = vpop.f32.mrf.mxu3 }
  0xcc   : > { %v545_v31 = vadd.f32 %v520_v17, %v421_v29  ;;  %v546_v32 = vadd.f32 %v540_v18, %v441_v30 }
  0xce   : > { %v584_v23 = vpop.f32.mrf.mxu0  ;;  %v604_v24 = vpop.f32.mrf.mxu1 }
  0xcf   : > { %v647_v25 = vadd.f32 %v584_v23, %v543_v19  ;;  %v648_v26 = vadd.f32 %v604_v24, %v544_v20 }
  0xd1   : > { %v661_v27 = vadd.f32 %v653_v21, %v647_v25  ;;  %v662_v28 = vadd.f32 %v654_v22, %v648_v26 }
  0xd3   : > { %665 = vst [vmem:[%s238_s25] sm:$0xff] %v661_v27 }
  0xd4   : > { %823 = vst [vmem:[%s238_s25 + $0x8] sm:$0xff] %v662_v28 }
  0xd5   : > { %v624_v35 = vpop.f32.mrf.mxu2  ;;  %v644_v36 = vpop.f32.mrf.mxu3 }
  0xd6   : > { %v649_v37 = vadd.f32 %v624_v35, %v545_v31  ;;  %v650_v38 = vadd.f32 %v644_v36, %v546_v32 }
  0xd8   : > { %v663_v39 = vadd.f32 %v655_v33, %v649_v37  ;;  %v664_v40 = vadd.f32 %v656_v34, %v650_v38 }
  0xda   : > { %824 = vst [vmem:[%s238_s25 + $0x10] sm:$0xff] %v663_v39 }
  0xdb   : > { %825 = vst [vmem:[%s238_s25 + $0x18] sm:$0xff] %v664_v40 }
  0xdc   : > { %1039 = shalt.err (!%p1036_p0)
}
  0xdd   : > { %s1106_s11 = smov 128   ;;  %s1107_s24 = smov 8  }
  0xde   : > { %843 = dma.vmem_to_hbm [thread:$0]  (%p1211_p7), %s687_s28, 512, %s689_s15, %s673_s30, %s1106_s11, %s1106_s11, %s1107_s24  }
  0xdf PF: > { %s703_s26 = sand.u32 1, %s1078_s12   ;;  %p857_p3 = pnand %p798_p11, %p1177_p6 }
  0xe0   : > { %s704_s18 = scalar_lea.sflag [#allocation4], %s703_s26 }
  0xe1   : > { %p858_p5 = pneg %p857_p3 }
  0xe3   : > { %1073 = dma.done.wait (%p858_p5), %s704_s18, 512  }
  0xe4   : > { %1075 = vsyncadd (%p858_p5), %s704_s18, 4294966784  ;;  %s20_s17 = sadd.s32 1, %s1098_s17   ;;  %s1321_s12 = smov %s1082_s13 }
  0xe5   : > { %p17_p9 = scmp.ge.s32.totalorder %s20_s17, 4   ;;  %s1322_s13 = smov %s1086_s14 }
  0xe6   : > { %s1323_s14 = smov %s1220_s29  ;;  %s1324_s15 = smov %s1094_s16 }
  0xe7   : > { %s1325_s16 = smov %s1327_s10  ;;  %19 = sbr.rel (!%p17_p9) target bundleno = 9 (0x9), region = 91 }
  0xec   :  { %710 = vsyncpa [#allocation3], 1 }
  0xed   :  { %712 = vsyncpa [#allocation3 + $0x1], 1 }
  0xee   :  { %713 = vsyncpa [#allocation6], 1 }
  0xef   :  { %714 = vsyncpa [#allocation4], 1 }
  0xf0   :  { %716 = vsyncpa [#allocation4 + $0x1], 1 }

// kernel: tpu_custom_call.1
= control target key start
LH: loop header
LB: loop body
LE: loop exit
PB: predicated region body
PF: predicated region fallthrough
CT: control target
= control target key end

     0   :  { %s1308_s0 = inlined_call_operand.hbm [shape: f32[2,4,8,32], index: 0, kind: input, shape index: {}]   ;;  %s1309_s1 = inlined_call_operand.hbm [shape: f32[4,32,512], index: 1, kind: input, shape index: {}]   ;;  %s1310_s2 = inlined_call_operand.hbm [shape: f32[1,512], index: 2, kind: input, shape index: {}]   ;;  %s1311_s3 = inlined_call_operand.hbm [shape: f32[2,4,8,128], index: 3, kind: output, shape index: {}]  }
   0x1   :  { %1312 = sst [smem:[#allocation12_spill]] %s1309_s1 }
   0x2   :  { %8 = vsyncpa [#allocation3], 0 }
   0x3   :  { %10 = vsyncpa [#allocation3 + $0x1], 0 }
   0x4   :  { %11 = vsyncpa [#allocation6], 0 }
   0x5   :  { %12 = vsyncpa [#allocation4], 0 }
   0x6   :  { %14 = vsyncpa [#allocation4 + $0x1], 0  ;;  %s1128_s12 = smov 0   ;;  %s1130_s13 = smov 0  }
   0x7   :  { %s1132_s14 = smov 0   ;;  %s1134_s15 = smov 0  }
   0x8   :  { %s1136_s16 = smov 0   ;;  %s1138_s17 = smov 0  }
   0x9 LB: > { %s793_s18 = sadd.s32 4294967295, %s1098_s17   ;;  %s794_s19 = sadd.s32 4294967294, %s1098_s17   ;;  %s1098_s17 = sphi %s1138_s17, %s20_s17   ;;  %s1094_s16 = sphi %s1136_s16, %s1325_s16   ;;  %s1090_s15 = sphi %s1134_s15, %s1324_s15   ;;  %s1086_s14 = sphi %s1132_s14, %s1323_s14   ;;  %s1082_s13 = sphi %s1130_s13, %s1322_s13   ;;  %s1078_s12 = sphi %s1128_s12, %s1321_s12  }
   0xa   : > { %p54_p0 = scmp.ne.s32.totalorder %s1082_s13, %s1078_s12  ;;  %p1162_p1 = scmp.eq.s32.totalorder %s793_s18, 0 }
   0xb   : > { %p1166_p2 = scmp.eq.s32.totalorder %s793_s18, 1  ;;  %p128_p3 = scmp.eq.s32.totalorder %s794_s19, 1 }
   0xc   : > { %p1172_p4 = por %p1162_p1, %p54_p0  ;;  %p795_p5 = scmp.ge.s32.totalorder %s1098_s17, 1 }
   0xd   : > { %p1177_p6 = por %p128_p3, %p54_p0  ;;  %p135_p7 = scmp.lt.s32.totalorder %s1098_s17, 3 }
   0xe   : > { %s1317_s1 = sld [smem:[#allocation12_spill]]  ;;  %s1100_s28 = smov [#allocation5]  }
   0xf   : > { %p1185_p8 = pnand %p795_p5, %p135_p7  ;;  %s148_s29 = sshll.u32 %s1100_s28, 4  ;;  %s149_s29 = int_to_ptr.vmem [resolvable:$true] %s148_s29 }
  0x10   : > { %p798_p11 = scmp.ge.s32.totalorder %s1098_s17, 2  ;;  %s161_s5 = sshll.u32 %s1310_s2, 4  ;;  %s162_s5 = int_to_ptr.hbm [resolvable:$true] %s161_s5 }
  0x11   : > { %p845_p9 = pneg %p1185_p8  ;;  %s1101_s6 = smov 512  }
  0x12   : > { %s1102_s7 = smov 32   ;;  %s1103_s8 = smov [#allocation7]  }
  0x13   : > { %p846_p10 = pnand %p845_p9, %p1162_p1  ;;  %s163_s9 = sshll.u32 %s1103_s8, 4  ;;  %s164_s9 = int_to_ptr.vmem [resolvable:$true] %s163_s9 }
  0x14   : > { %s146_s26 = sshll.u32 %s1317_s1, 4  ;;  %s32_s10 = sadd.s32 1, %s1094_s16  ;;  %s147_s26 = int_to_ptr.hbm [resolvable:$true] %s146_s26 }
  0x15   : > { %848 = dma.hbm_to_vmem [thread:$0]  (!%p846_p10), %s147_s26, 8192, %s149_s29, [#allocation6], %s1101_s6, %s1101_s6, %s1102_s7  }
  0x16   : > { %851 = dma.hbm_to_vmem [thread:$0]  (!%p846_p10), %s162_s5, 64, %s164_s9, [#allocation6]  }
  0x17   : > { %s41_s11 = sadd.s32 1, %s1086_s14  ;;  %p34_p12 = scmp.ge.s32.totalorder %s32_s10, 2 }
  0x18   : > { %p48_p13 = scmp.ne.s32.totalorder %s1086_s14, %s1082_s13  ;;  %p49_p0 = scmp.eq.s32.totalorder %s1098_s17, 0 }
  0x19   : > { %p862_p3 = scmp.lt.s32.totalorder %s1098_s17, 2  ;;  %s1327_s10 = smov (%p34_p12, %s32_s10), 0 }
  0x1a   : > { %p1205_p5 = por %p49_p0, %p48_p13  ;;  %p1211_p7 = por %p1166_p2, %p48_p13 }
  0x1b   : > { %s36_s24 = ssub.s32 %s1094_s16, %s1327_s10  ;;  %s174_s25 = sand.u32 1, %s1086_s14  }
  0x1c   : > { %p39_p9 = scmp.eq.s32.totalorder %s36_s24, 0  ;;  %s799_s26 = sshll.u32 %s174_s25, 5 }
  0x1d   : > { %s831_s28 = sshll.u32 %s1094_s16, 5  ;;  %s178_s7 = scalar_lea.vmem [#allocation2], %s799_s26 }
  0x1e   : > { %s1220_s29 = scalar_select %p39_p9, %s1086_s14, %s41_s11  }
  0x1f   : > { %s184_s5 = scalar_lea.hbm %s1308_s0, %s831_s28  ;;  %s187_s8 = sshll.u32 %s178_s7, 4  ;;  %s188_s8 = int_to_ptr.vmem [resolvable:$true] %s187_s8 }
  0x20   : > { %s185_s6 = sshll.u32 %s184_s5, 4  ;;  %p853_p2 = pnand %p862_p3, %p1205_p5  ;;  %s186_s6 = int_to_ptr.hbm [resolvable:$true] %s185_s6 }
  0x21   : > { %s175_s21 = scalar_lea.sflag [#allocation3], %s174_s25  ;;  %s1104_s9 = smov 128  }
  0x22   : > { %s1105_s1 = smov 8   ;;  %199 = sbr.rel (%p1185_p8) target bundleno = 223 (0xdf), region = 32 }
  0x23   : > { %855 = dma.hbm_to_vmem [thread:$0]  (!%p853_p2), %s186_s6, 512, %s188_s8, %s175_s21, %s1104_s9, %s1104_s9, %s1105_s1  }
  0x24   : > { %s1232_s11 = sand.u32 (!%p1185_p8), 1, %s1082_s13  }
  0x25   : > { %s803_s24 = sshll.u32 (!%p1185_p8), %s1232_s11, 5  ;;  %s202_s26 = scalar_lea.sflag (!%p1185_p8), [#allocation3], %s1232_s11 }
  0x26   : > { %s1238_s18 = scalar_lea.vmem (!%p1185_p8), [#allocation2], %s803_s24 }
  0x27   : > { %1065 = dma.done.wait (%p1172_p4), %s202_s26, 512  }
  0x28   : > { %1067 = vsyncadd (%p1172_p4), %s202_s26, 4294966784 }
  0x29   : > { %1069 = dma.done.wait (%p1162_p1), [#allocation6], 8256  }
  0x2a   : > { %1071 = vsyncadd (%p1162_p1), [#allocation6], 4294959040  ;;  %v272_v0 = vld [vmem:[#allocation5 + $0xe0] sm:$0xff]  ;;  %v273_v1 = vld [vmem:[#allocation5 + $0xe8] sm:$0xff]  ;;  %vm276_vm0 = vcmask 261120   ;;  %s832_s1 = sshll.u32 %s1090_s15, 5 }
  0x2b   : > { %v274_v2 = vld [vmem:[#allocation5 + $0xf0] sm:$0xff]  ;;  %292 = vmatpush.msra.mxu0 %v272_v0  ;;  %312 = vmatpush.msra.mxu1 %v273_v1  ;;  %v275_v3 = vld [vmem:[#allocation5 + $0xf8] sm:$0xff]  ;;  %v268_v4 = vld [vmem:[#allocation5 + $0xc0] sm:$0xff]  ;;  %s685_s27 = scalar_lea.hbm %s1311_s3, %s832_s1  ;;  %s238_s25 = scalar_lea.vmem [#allocation8], %s803_s24 }
  0x2c   : > { %v269_v5 = vld [vmem:[#allocation5 + $0xc8] sm:$0xff]  ;;  %332 = vmatpush.msra.mxu2 %v274_v2  ;;  %352 = vmatpush.msra.mxu3 %v275_v3  ;;  %v270_v6 = vld [vmem:[#allocation5 + $0xd0] sm:$0xff]  ;;  %v271_v7 = vld [vmem:[#allocation5 + $0xd8] sm:$0xff]  ;;  %s686_s28 = sshll.u32 %s238_s25, 4  ;;  %s688_s15 = sshll.u32 %s685_s27, 4  ;;  %s687_s28 = int_to_ptr.vmem [resolvable:$true] %s686_s28  ;;  %s689_s15 = int_to_ptr.hbm [resolvable:$true] %s688_s15 }
  0x2d   : > { %v264_v8 = vld [vmem:[#allocation5 + $0xa0] sm:$0xff]  ;;  %293 = vmatpush.msra.mxu0 %v268_v4  ;;  %313 = vmatpush.msra.mxu1 %v269_v5  ;;  %v265_v9 = vld [vmem:[#allocation5 + $0xa8] sm:$0xff]  ;;  %v266_v10 = vld [vmem:[#allocation5 + $0xb0] sm:$0xff]  ;;  %s673_s30 = scalar_lea.sflag [#allocation4], %s1232_s11  ;;  %s1026_s4 = sshra.s32 %s689_s15, 4  ;;  %s1027_s4 = int_to_ptr.hbm [resolvable:$true] %s1026_s4 }
  0x2e   : > { %v267_v11 = vld [vmem:[#allocation5 + $0xb8] sm:$0xff]  ;;  %333 = vmatpush.msra.mxu2 %v270_v6  ;;  %353 = vmatpush.msra.mxu3 %v271_v7  ;;  %v260_v12 = vld [vmem:[#allocation5 + $0x80] sm:$0xff]  ;;  %v261_v13 = vld [vmem:[#allocation5 + $0x88] sm:$0xff]  ;;  %s1028_s5 = scalar_lea.hbm %s1027_s4, 32  ;;  %s1032_s8 = scalar_lea.hbm %s1311_s3, 64 }
  0x2f   : > { %294 = vmatpush.msra.mxu0 %v264_v8  ;;  %314 = vmatpush.msra.mxu1 %v265_v9  ;;  %v262_v14 = vld [vmem:[#allocation5 + $0x90] sm:$0xff]  ;;  %v263_v15 = vld [vmem:[#allocation5 + $0x98] sm:$0xff]  ;;  %v240_v16 = vld [vmem:[%s1238_s18 + $0x8] sm:$0xff]  ;;  %p1029_p1 = scmp.ne.s32.totalorder %s1027_s4, %s1028_s5  ;;  %p1033_p10 = scmp.lt.s32.totalorder %s1027_s4, %s1311_s3 }
  0x30   : > { %334 = vmatpush.msra.mxu2 %v266_v10  ;;  %354 = vmatpush.msra.mxu3 %v267_v11  ;;  %v257_v17 = vld [vmem:[#allocation5 + $0x70] sm:$0xff]  ;;  %v258_v18 = vld [vmem:[#allocation5 + $0x78] sm:$0xff]  ;;  %v255_v19 = vld [vmem:[#allocation5 + $0x60] sm:$0xff]  ;;  %p1034_p12 = scmp.lt.s32.totalorder %s1032_s8, %s1028_s5 }
  0x31   : > { %295 = vmatpush.msra.mxu0 %v260_v12  ;;  %315 = vmatpush.msra.mxu1 %v261_v13  ;;  %v256_v20 = vld [vmem:[#allocation5 + $0x68] sm:$0xff]  ;;  %v253_v21 = vld [vmem:[#allocation5 + $0x50] sm:$0xff]  ;;  %v254_v22 = vld [vmem:[#allocation5 + $0x58] sm:$0xff]  ;;  %p1030_p4 = pnand %p1029_p1, %p1211_p7 }
  0x32   : > { %335 = vmatpush.msra.mxu2 %v262_v14  ;;  %355 = vmatpush.msra.mxu3 %v263_v15  ;;  %v251_v23 = vld [vmem:[#allocation5 + $0x40] sm:$0xff]  ;;  %v252_v24 = vld [vmem:[#allocation5 + $0x48] sm:$0xff]  ;;  %v249_v25 = vld [vmem:[#allocation5 + $0x30] sm:$0xff]  ;;  %p1035_p13 = por %p1034_p12, %p1033_p10 }
  0x33   : > { %807 = vmatmul.msk.f32.vlgmr.msra.gmra.mxu0 %vm276_vm0, %v240_v16  ;;  %808 = vmatmul.msk.f32.vlgmr.msra.gmra.mxu1 %vm276_vm0, %v240_v16  ;;  %v250_v26 = vld [vmem:[#allocation5 + $0x38] sm:$0xff]  ;;  %v247_v27 = vld [vmem:[#allocation5 + $0x20] sm:$0xff]  ;;  %v248_v28 = vld [vmem:[#allocation5 + $0x28] sm:$0xff]  ;;  %p1031_p8 = pneg %p1030_p4 }
  0x34   : > { %809 = vmatmul.msk.f32.vlgmr.msra.gmra.mxu2 %vm276_vm0, %v240_v16  ;;  %810 = vmatmul.msk.f32.vlgmr.msra.gmra.mxu3 %vm276_vm0, %v240_v16  ;;  %v245_v29 = vld [vmem:[#allocation5 + $0x10] sm:$0xff]  ;;  %v246_v30 = vld [vmem:[#allocation5 + $0x18] sm:$0xff]  ;;  %v243_v31 = vld [vmem:[#allocation5] sm:$0xff] }
  0x35   : > { %415 = vmatpush.msrb.mxu2 %v257_v17  ;;  %435 = vmatpush.msrb.mxu3 %v258_v18  ;;  %v244_v32 = vld [vmem:[#allocation5 + $0x8] sm:$0xff]  ;;  %v239_v33 = vld [vmem:[%s1238_s18] sm:$0xff]  ;;  %v458_v34 = vld [vmem:[#allocation5 + $0x170] sm:$0xff]  ;;  %p1036_p0 = pnand %p1035_p13, %p1031_p8 }
  0x36   : > { %375 = vmatpush.msrb.mxu0 %v255_v19  ;;  %395 = vmatpush.msrb.mxu1 %v256_v20  ;;  %v459_v35 = vld [vmem:[#allocation5 + $0x178] sm:$0xff]  ;;  %v456_v36 = vld [vmem:[#allocation5 + $0x160] sm:$0xff]  ;;  %v457_v37 = vld [vmem:[#allocation5 + $0x168] sm:$0xff] }
  0x37   : > { %416 = vmatpush.msrb.mxu2 %v253_v21  ;;  %436 = vmatpush.msrb.mxu3 %v254_v22  ;;  %v454_v38 = vld [vmem:[#allocation5 + $0x150] sm:$0xff]  ;;  %v455_v39 = vld [vmem:[#allocation5 + $0x158] sm:$0xff]  ;;  %v452_v40 = vld [vmem:[#allocation5 + $0x140] sm:$0xff] }
  0x38   : > { %376 = vmatpush.msrb.mxu0 %v251_v23  ;;  %396 = vmatpush.msrb.mxu1 %v252_v24  ;;  %v453_v41 = vld [vmem:[#allocation5 + $0x148] sm:$0xff]  ;;  %v450_v42 = vld [vmem:[#allocation5 + $0x130] sm:$0xff]  ;;  %v451_v43 = vld [vmem:[#allocation5 + $0x138] sm:$0xff] }
  0x39   : > { %417 = vmatpush.msrb.mxu2 %v249_v25  ;;  %437 = vmatpush.msrb.mxu3 %v250_v26  ;;  %v448_v44 = vld [vmem:[#allocation5 + $0x120] sm:$0xff]  ;;  %v449_v45 = vld [vmem:[#allocation5 + $0x128] sm:$0xff]  ;;  %v446_v46 = vld [vmem:[#allocation5 + $0x110] sm:$0xff] }
  0x3a   : > { %377 = vmatpush.msrb.mxu0 %v247_v27  ;;  %397 = vmatpush.msrb.mxu1 %v248_v28  ;;  %v447_v47 = vld [vmem:[#allocation5 + $0x118] sm:$0xff]  ;;  %v444_v48 = vld [vmem:[#allocation5 + $0x100] sm:$0xff]  ;;  %v445_v49 = vld [vmem:[#allocation5 + $0x108] sm:$0xff] }
  0x3b   : > { %418 = vmatpush.msrb.mxu2 %v245_v29  ;;  %438 = vmatpush.msrb.mxu3 %v246_v30  ;;  %v241_v50 = vld [vmem:[%s1238_s18 + $0x10] sm:$0xff]  ;;  %v563_v52 = vld [vmem:[#allocation5 + $0x1f8] sm:$0xff]  ;;  %v560_v53 = vld [vmem:[#allocation5 + $0x1e0] sm:$0xff] }
  0x3c   : > { %378 = vmatpush.msrb.mxu0 %v243_v31  ;;  %398 = vmatpush.msrb.mxu1 %v244_v32  ;;  %v562_v51 = vld [vmem:[#allocation5 + $0x1f0] sm:$0xff]  ;;  %v561_v54 = vld [vmem:[#allocation5 + $0x1e8] sm:$0xff]  ;;  %v559_v56 = vld [vmem:[#allocation5 + $0x1d8] sm:$0xff] }
  0x3d   : > { %811 = vmatmul.msk.f32.vlgmr.msrb.gmra.mxu0 %vm276_vm0, %v239_v33  ;;  %812 = vmatmul.msk.f32.vlgmr.msrb.gmra.mxu1 %vm276_vm0, %v239_v33  ;;  %v558_v55 = vld [vmem:[#allocation5 + $0x1d0] sm:$0xff]  ;;  %v556_v57 = vld [vmem:[#allocation5 + $0x1c0] sm:$0xff]  ;;  %v557_v58 = vld [vmem:[#allocation5 + $0x1c8] sm:$0xff] }
  0x3e   : > { %813 = vmatmul.msk.f32.vlgmr.msrb.gmra.mxu2 %vm276_vm0, %v239_v33  ;;  %814 = vmatmul.msk.f32.vlgmr.msrb.gmra.mxu3 %vm276_vm0, %v239_v33  ;;  %v554_v59 = vld [vmem:[#allocation5 + $0x1b0] sm:$0xff]  ;;  %v555_v60 = vld [vmem:[#allocation5 + $0x1b8] sm:$0xff]  ;;  %v552_v61 = vld [vmem:[#allocation5 + $0x1a0] sm:$0xff] }
  0x3f   : > { %515 = vmatpush.msra.mxu2 %v458_v34  ;;  %535 = vmatpush.msra.mxu3 %v459_v35  ;;  %v553_v62 = vld [vmem:[#allocation5 + $0x1a8] sm:$0xff]  ;;  %v550_v63 = vld [vmem:[#allocation5 + $0x190] sm:$0xff]  ;;  %v551_v0 = vld [vmem:[#allocation5 + $0x198] sm:$0xff] }
  0x40   : > { %475 = vmatpush.msra.mxu0 %v456_v36  ;;  %495 = vmatpush.msra.mxu1 %v457_v37  ;;  %v548_v1 = vld [vmem:[#allocation5 + $0x180] sm:$0xff]  ;;  %v549_v2 = vld [vmem:[#allocation5 + $0x188] sm:$0xff]  ;;  %v242_v3 = vld [vmem:[%s1238_s18 + $0x18] sm:$0xff] }
  0x41   : > { %516 = vmatpush.msra.mxu2 %v454_v38  ;;  %536 = vmatpush.msra.mxu3 %v455_v39  ;;  %v651_v14 = vld [vmem:[#allocation7] sm:$0xf] }
  0x42   : > { %476 = vmatpush.msra.mxu0 %v452_v40  ;;  %496 = vmatpush.msra.mxu1 %v453_v41  ;;  %v653_v21 = vperm.slane %v651_v14, 0  ;;  %v654_v22 = vperm.slane %v651_v14, 1  ;;  %v655_v33 = vperm.slane %v651_v14, 2  ;;  %v656_v34 = vperm.slane %v651_v14, 3 }
  0x43   : > { %517 = vmatpush.msra.mxu2 %v450_v42  ;;  %537 = vmatpush.msra.mxu3 %v451_v43 }
  0x44   : > { %477 = vmatpush.msra.mxu0 %v448_v44  ;;  %497 = vmatpush.msra.mxu1 %v449_v45 }
  0x45   : > { %518 = vmatpush.msra.mxu2 %v446_v46  ;;  %538 = vmatpush.msra.mxu3 %v447_v47 }
  0x46   : > { %478 = vmatpush.msra.mxu0 %v444_v48  ;;  %498 = vmatpush.msra.mxu1 %v445_v49 }
  0x47   : > { %815 = vmatmul.msk.f32.vlgmr.msra.gmra.mxu0 %vm276_vm0, %v241_v50  ;;  %816 = vmatmul.msk.f32.vlgmr.msra.gmra.mxu1 %vm276_vm0, %v241_v50 }
  0x48   : > { %817 = vmatmul.msk.f32.vlgmr.msra.gmra.mxu2 %vm276_vm0, %v241_v50  ;;  %818 = vmatmul.msk.f32.vlgmr.msra.gmra.mxu3 %vm276_vm0, %v241_v50 }
  0x49   : > { %619 = vmatpush.msrb.mxu2 %v562_v51  ;;  %639 = vmatpush.msrb.mxu3 %v563_v52 }
  0x4a   : > { %579 = vmatpush.msrb.mxu0 %v560_v53  ;;  %599 = vmatpush.msrb.mxu1 %v561_v54 }
  0x4b   : > { %620 = vmatpush.msrb.mxu2 %v558_v55  ;;  %640 = vmatpush.msrb.mxu3 %v559_v56 }
  0x4c   : > { %580 = vmatpush.msrb.mxu0 %v556_v57  ;;  %600 = vmatpush.msrb.mxu1 %v557_v58 }
  0x4d   : > { %621 = vmatpush.msrb.mxu2 %v554_v59  ;;  %641 = vmatpush.msrb.mxu3 %v555_v60 }
  0x4e   : > { %581 = vmatpush.msrb.mxu0 %v552_v61  ;;  %601 = vmatpush.msrb.mxu1 %v553_v62 }
  0x4f   : > { %622 = vmatpush.msrb.mxu2 %v550_v63  ;;  %642 = vmatpush.msrb.mxu3 %v551_v0 }
  0x50   : > { %582 = vmatpush.msrb.mxu0 %v548_v1  ;;  %602 = vmatpush.msrb.mxu1 %v549_v2 }
  0x51   : > { %819 = vmatmul.msk.f32.vlgmr.msrb.gmra.mxu0 %vm276_vm0, %v242_v3  ;;  %820 = vmatmul.msk.f32.vlgmr.msrb.gmra.mxu1 %vm276_vm0, %v242_v3 }
  0x52   : > { %821 = vmatmul.msk.f32.vlgmr.msrb.gmra.mxu2 %vm276_vm0, %v242_v3  ;;  %822 = vmatmul.msk.f32.vlgmr.msrb.gmra.mxu3 %vm276_vm0, %v242_v3 }
  0xb0   : > { %v297_v4 = vpop.f32.mrf.mxu0  ;;  %v317_v5 = vpop.f32.mrf.mxu1 }
  0xb7   : > { %v337_v6 = vpop.f32.mrf.mxu2  ;;  %v357_v7 = vpop.f32.mrf.mxu3 }
  0xba   : > { %v380_v8 = vpop.f32.mrf.mxu0  ;;  %v400_v9 = vpop.f32.mrf.mxu1 }
  0xbb   : > { %v381_v15 = vadd.f32 %v380_v8, %v297_v4  ;;  %v401_v16 = vadd.f32 %v400_v9, %v317_v5 }
  0xc1   : > { %v420_v10 = vpop.f32.mrf.mxu2  ;;  %v440_v11 = vpop.f32.mrf.mxu3 }
  0xc2   : > { %v421_v29 = vadd.f32 %v420_v10, %v337_v6  ;;  %v441_v30 = vadd.f32 %v440_v11, %v357_v7 }
  0xc4   : > { %v480_v12 = vpop.f32.mrf.mxu0  ;;  %v500_v13 = vpop.f32.mrf.mxu1 }
  0xc5   : > { %v543_v19 = vadd.f32 %v480_v12, %v381_v15  ;;  %v544_v20 = vadd.f32 %v500_v13, %v401_v16 }
  0xcb   : > { %v520_v17 = vpop.f32.mrf.mxu2  ;;  %v540_v18 = vpop.f32.mrf.mxu3 }
  0xcc   : > { %v545_v31 = vadd.f32 %v520_v17, %v421_v29  ;;  %v546_v32 = vadd.f32 %v540_v18, %v441_v30 }
  0xce   : > { %v584_v23 = vpop.f32.mrf.mxu0  ;;  %v604_v24 = vpop.f32.mrf.mxu1 }
  0xcf   : > { %v647_v25 = vadd.f32 %v584_v23, %v543_v19  ;;  %v648_v26 = vadd.f32 %v604_v24, %v544_v20 }
  0xd1   : > { %v661_v27 = vadd.f32 %v653_v21, %v647_v25  ;;  %v662_v28 = vadd.f32 %v654_v22, %v648_v26 }
  0xd3   : > { %665 = vst [vmem:[%s238_s25] sm:$0xff] %v661_v27 }
  0xd4   : > { %823 = vst [vmem:[%s238_s25 + $0x8] sm:$0xff] %v662_v28 }
  0xd5   : > { %v624_v35 = vpop.f32.mrf.mxu2  ;;  %v644_v36 = vpop.f32.mrf.mxu3 }
  0xd6   : > { %v649_v37 = vadd.f32 %v624_v35, %v545_v31  ;;  %v650_v38 = vadd.f32 %v644_v36, %v546_v32 }
  0xd8   : > { %v663_v39 = vadd.f32 %v655_v33, %v649_v37  ;;  %v664_v40 = vadd.f32 %v656_v34, %v650_v38 }
  0xda   : > { %824 = vst [vmem:[%s238_s25 + $0x10] sm:$0xff] %v663_v39 }
  0xdb   : > { %825 = vst [vmem:[%s238_s25 + $0x18] sm:$0xff] %v664_v40 }
  0xdc   : > { %1039 = shalt.err (!%p1036_p0)
}
  0xdd   : > { %s1106_s11 = smov 128   ;;  %s1107_s24 = smov 8  }
  0xde   : > { %843 = dma.vmem_to_hbm [thread:$0]  (%p1211_p7), %s687_s28, 512, %s689_s15, %s673_s30, %s1106_s11, %s1106_s11, %s1107_s24  }
  0xdf PF: > { %s703_s26 = sand.u32 1, %s1078_s12   ;;  %p857_p3 = pnand %p798_p11, %p1177_p6 }
  0xe0   : > { %s704_s18 = scalar_lea.sflag [#allocation4], %s703_s26 }
  0xe1   : > { %p858_p5 = pneg %p857_p3 }
  0xe3   : > { %1073 = dma.done.wait (%p858_p5), %s704_s18, 512  }
  0xe4   : > { %1075 = vsyncadd (%p858_p5), %s704_s18, 4294966784  ;;  %s20_s17 = sadd.s32 1, %s1098_s17   ;;  %s1321_s12 = smov %s1082_s13 }
  0xe5   : > { %p17_p9 = scmp.ge.s32.totalorder %s20_s17, 4   ;;  %s1322_s13 = smov %s1086_s14 }
  0xe6   : > { %s1323_s14 = smov %s1220_s29  ;;  %s1324_s15 = smov %s1094_s16 }
  0xe7   : > { %s1325_s16 = smov %s1327_s10  ;;  %19 = sbr.rel (!%p17_p9) target bundleno = 9 (0x9), region = 91 }
  0xec   :  { %710 = vsyncpa [#allocation3], 1 }
  0xed   :  { %712 = vsyncpa [#allocation3 + $0x1], 1 }
  0xee   :  { %713 = vsyncpa [#allocation6], 1 }
  0xef   :  { %714 = vsyncpa [#allocation4], 1 }
  0xf0   :  { %716 = vsyncpa [#allocation4 + $0x1], 1 }

</bundles_post_ra>
